<compile_context>
chip_gen: v5e
topology: v5e:2x2
jax: 0.10.0
libtpu: 0.0.40
codegen_flags: <defaults>
</compile_context>

<pallas_src>
import functools

import jax
import jax.numpy as jnp
import numpy as np
from jax import lax
from jax.experimental import pallas as pl
from jax.experimental.pallas import tpu as pltpu

_EPS = 1e-7
_NORM_EPS = 1e-12  # matches torch.nn.functional.normalize default eps


def _round_up(x, m):
    return ((x + m - 1) // m) * m


def _weak_neg_kernel(emb_ref, probs_ref, epos_ref, ppos_ref, idx_ref,
                     pos_out_ref, neg_out_ref, pos_acc, neg_acc, *,
                     theta, batch_size, block_b, blocks_per_core):
    c = pl.program_id(0)   # core-split axis ("parallel")
    i = pl.program_id(1)   # batch-block axis ("arbitrary", accumulates)

    @pl.when(i == 0)
    def _():
        pos_acc[...] = jnp.zeros_like(pos_acc)
        neg_acc[...] = jnp.zeros_like(neg_acc)

    emb = emb_ref[...].astype(jnp.float32)       # (Bt, L, D)
    probs = probs_ref[...].astype(jnp.float32)   # (Bt, L)
    e_p = epos_ref[...].astype(jnp.float32)      # (Bt, D)  positive row per sample
    p_pos = ppos_ref[...].astype(jnp.float32)    # (Bt, 1)  positive prob per sample
    idx = idx_ref[...]                           # (Bt, 1)  int32 positive index

    # Unclamped global block index.  Rows past the true batch (batch padding in
    # the tail block, or the clamped overshoot block of the second core) are
    # masked with a where-select, which zeroes them even if the uninitialized
    # tail data produced inf/NaN.
    gb = c * blocks_per_core + i
    local = lax.broadcasted_iota(jnp.int32, (block_b, 1), 0)
    valid = (gb * block_b + local) < batch_size           # (Bt, 1) bool

    # positive_loss_i = -sum(labels * log(clip(p))) == -log(clip(p[pos_idx]))
    # TODO(synk): assumes strictly one-hot labels (the reference's
    # argwhere().item() requires exactly one positive per sample).
    p = jnp.clip(probs, _EPS, 1.0 - _EPS)
    pos_per = -jnp.log(jnp.clip(p_pos, _EPS, 1.0 - _EPS))  # (Bt, 1)

    # Positive-row cosine similarities without forming the LxL matrix:
    #   cos[l] = <e_l, e_p> / (max(||e_l||, eps) * max(||e_p||, eps))
    sq_norm = jnp.sum(emb * emb, axis=2)                         # (Bt, L)
    sq_norm_p = jnp.sum(e_p * e_p, axis=1, keepdims=True)        # (Bt, 1)
    dots = jnp.sum(emb * e_p[:, None, :], axis=2)                # (Bt, L)
    inv = (lax.rsqrt(jnp.maximum(sq_norm, _NORM_EPS * _NORM_EPS)) *
           lax.rsqrt(jnp.maximum(sq_norm_p, _NORM_EPS * _NORM_EPS)))
    cos = dots * inv                                             # (Bt, L)

    # threshold_relu + zeroing the positive column folded into one select.
    lane = lax.broadcasted_iota(jnp.int32, cos.shape, 1)
    w = jnp.where((cos > theta) & (lane != idx), cos, jnp.zeros_like(cos))

    # negative_loss_i = -sum(w * log(1 - p))
    neg_per = -jnp.sum(w * jnp.log(1.0 - p), axis=1, keepdims=True)  # (Bt, 1)

    pos_acc[...] += jnp.where(valid, pos_per, 0.0)
    neg_acc[...] += jnp.where(valid, neg_per, 0.0)

    @pl.when(i == pl.num_programs(1) - 1)
    def _():
        pos_out_ref[...] = jnp.sum(pos_acc[...], keepdims=True)
        neg_out_ref[...] = jnp.sum(neg_acc[...], keepdims=True)


def weak_negative_loss(image_embeddings, predicted_probs, positive_labels,
                       theta=0.0, block_b=None):
    """Returns (total_loss, positive_loss, negative_loss), averaged over batch."""
    B, L, D = image_embeddings.shape

    # Tiny wrapper-side gathers (O(B*D) and O(B)) replace the one-hot labels
    # stream and the in-kernel (bt,L,D) mask multiply + sublane reduce.
    pos_idx = jnp.argmax(positive_labels, axis=1).astype(jnp.int32)      # (B,)
    e_pos = jnp.take_along_axis(
        image_embeddings, pos_idx[:, None, None], axis=1).reshape(B, D)  # (B, D)
    p_pos = jnp.take_along_axis(predicted_probs, pos_idx[:, None], axis=1)  # (B,1)
    idx2d = pos_idx[:, None]                                             # (B, 1)

    # Per-generation VMEM budget (v5e/v6e: 128 MiB, v7x: 64 MiB physical).
    try:
        vmem_cap = int(pltpu.get_tpu_info().vmem_capacity_bytes)
    except Exception:
        vmem_cap = 64 * 1024 * 1024
    vmem_limit = min((vmem_cap * 3) // 4, 100 * 1024 * 1024)

    itemsize = int(jnp.dtype(image_embeddings.dtype).itemsize)
    if block_b is None:
        # Target ~4 MiB of (lane/sublane-padded) emb bytes per grid step.
        sub = 8 * max(1, 4 // itemsize)            # 8 for f32, 16 for bf16, ...
        padded_sample = _round_up(D, 128) * _round_up(L, sub) * itemsize
        bt = max(1, (4 * 1024 * 1024) // padded_sample)
        bt = min(bt, 1024)
        if bt >= B:
            bt = B
        else:
            bt = min(max(8, (bt // 8) * 8), B)
    else:
        bt = max(1, min(int(block_b), B))
        if bt < B and bt % 8 != 0:                 # keep (8,128) tiling legal
            bt = min(_round_up(bt, 8), B)

    nb = (B + bt - 1) // bt                        # number of batch blocks
    ncores = 2 if nb >= 2 else 1                   # v7x: 2 TCs; harmless on 1-TC
    bpc = (nb + ncores - 1) // ncores              # blocks per core

    def batch_block(c, i):
        # Clamp so the second core's overshoot step re-reads a valid block
        # (its rows are fully masked in-kernel).
        return jnp.minimum(c * bpc + i, nb - 1)

    kernel = functools.partial(
        _weak_neg_kernel, theta=float(theta), batch_size=B, block_b=bt,
        blocks_per_core=bpc)

    pos_part, neg_part = pl.pallas_call(
        kernel,
        out_shape=(
            jax.ShapeDtypeStruct((ncores, 1), jnp.float32),
            jax.ShapeDtypeStruct((ncores, 1), jnp.float32),
        ),
        grid=(ncores, bpc),
        in_specs=[
            pl.BlockSpec((bt, L, D), lambda c, i: (batch_block(c, i), 0, 0)),
            pl.BlockSpec((bt, L),    lambda c, i: (batch_block(c, i), 0)),
            pl.BlockSpec((bt, D),    lambda c, i: (batch_block(c, i), 0)),
            pl.BlockSpec((bt, 1),    lambda c, i: (batch_block(c, i), 0)),
            pl.BlockSpec((bt, 1),    lambda c, i: (batch_block(c, i), 0)),
        ],
        out_specs=(
            pl.BlockSpec((1, 1), lambda c, i: (c, 0)),
            pl.BlockSpec((1, 1), lambda c, i: (c, 0)),
        ),
        scratch_shapes=[
            pltpu.VMEM((bt, 1), jnp.float32),
            pltpu.VMEM((bt, 1), jnp.float32),
        ],
        compiler_params=pltpu.CompilerParams(
            dimension_semantics=("parallel", "arbitrary"),
            vmem_limit_bytes=int(vmem_limit),
        ),
    )(image_embeddings, predicted_probs, e_pos, p_pos, idx2d)

    pos = jnp.sum(pos_part) / B
    neg = jnp.sum(neg_part) / B
    return pos + neg, pos, neg


def _reference(image_embeddings, predicted_probs, positive_labels, theta=0.0):
    """Pure-JAX reference mirroring the PyTorch loop semantics."""
    B = image_embeddings.shape[0]
    pos_loss = 0.0
    neg_loss = 0.0
    for i in range(B):
        p = jnp.clip(predicted_probs[i].astype(jnp.float32), _EPS, 1.0 - _EPS)
        pos_loss += -jnp.sum(positive_labels[i] * jnp.log(p))
        e = image_embeddings[i].astype(jnp.float32)
        n = e / jnp.maximum(jnp.linalg.norm(e, axis=1, keepdims=True), _NORM_EPS)
        cos = n @ n.T
        beta = jnp.where(cos > theta, cos, 0.0)
        p_idx = int(jnp.argmax(positive_labels[i]))
        w = beta[:, p_idx].at[p_idx].set(0.0)
        neg_loss += -jnp.sum(w * jnp.log(1.0 - p))
    return (pos_loss + neg_loss) / B, pos_loss / B, neg_loss / B


if __name__ == "__main__":
    key = jax.random.PRNGKey(0)

    def run_case(B, L, D, case_key, theta=0.0, emb_dtype=jnp.float32,
                 block_b=None):
        k1, k2, k3 = jax.random.split(case_key, 3)
        emb = jax.random.normal(k1, (B, L, D), dtype=jnp.float32).astype(emb_dtype)
        probs = jax.nn.sigmoid(jax.random.normal(k2, (B, L), dtype=jnp.float32))
        pos_idx = jax.random.randint(k3, (B,), 0, L)
        labels = jax.nn.one_hot(pos_idx, L, dtype=jnp.float32)

        total, pos, neg = weak_negative_loss(emb, probs, labels, theta=theta,
                                             block_b=block_b)
        jax.block_until_ready((total, pos, neg))

        ref_total, ref_pos, ref_neg = _reference(emb, probs, labels, theta=theta)
        np.testing.assert_allclose(np.asarray(total), np.asarray(ref_total),
                                   rtol=2e-4, atol=2e-4)
        np.testing.assert_allclose(np.asarray(pos), np.asarray(ref_pos),
                                   rtol=2e-4, atol=2e-4)
        np.testing.assert_allclose(np.asarray(neg), np.asarray(ref_neg),
                                   rtol=2e-4, atol=2e-4)

    k1, k2, k3, k4 = jax.random.split(key, 4)
    run_case(2, 8, 32, k1)                          # auto block, single block
    run_case(11, 16, 64, k2, block_b=8)             # partial tail block, 2 blocks
    run_case(20, 16, 64, k3, block_b=8)             # odd block count -> clamp path
    run_case(16, 8, 128, k4, emb_dtype=jnp.bfloat16,
             block_b=8)                             # bf16 embedding streaming

    print("KERNEL_OK")
</pallas_src>

<mosaic_0001>
module attributes {stable_mosaic.version = 11 : i64} {
  func.func @_weak_neg_kernel(%arg0: i32, %arg1: i32, %arg2: memref<2x8x32xf32, #tpu.memory_space<vmem>>, %arg3: memref<2x8xf32, #tpu.memory_space<vmem>>, %arg4: memref<2x32xf32, #tpu.memory_space<vmem>>, %arg5: memref<2x1xf32, #tpu.memory_space<vmem>>, %arg6: memref<2x1xi32, #tpu.memory_space<vmem>>, %arg7: memref<1x1xf32, #tpu.memory_space<vmem>>, %arg8: memref<1x1xf32, #tpu.memory_space<vmem>>, %arg9: memref<2x1xf32, #tpu.memory_space<vmem>>, %arg10: memref<2x1xf32, #tpu.memory_space<vmem>>) attributes {dimension_semantics = [#tpu.dimension_semantics<parallel>, #tpu.dimension_semantics<arbitrary>], iteration_bounds = array<i64: 1, 1>, scalar_prefetch = 0 : i64, scratch_operands = 2 : i64, tpu.core_type = #tpu.core_type<tc>, window_params = [{transform_indices = @transform_0, window_bounds = array<i64: 2, 8, 32>}, {transform_indices = @transform_1, window_bounds = array<i64: 2, 8>}, {transform_indices = @transform_2, window_bounds = array<i64: 2, 32>}, {transform_indices = @transform_3, window_bounds = array<i64: 2, 1>}, {transform_indices = @transform_4, window_bounds = array<i64: 2, 1>}, {transform_indices = @transform_5, window_bounds = array<i64: 1, 1>}, {transform_indices = @transform_6, window_bounds = array<i64: 1, 1>}]} {
    %c0_i32 = arith.constant 0 : i32
    %0 = arith.cmpi eq, %arg1, %c0_i32 : i32
    %1 = arith.extui %0 : i1 to i32
    %c0_i32_0 = arith.constant 0 : i32
    %2 = arith.cmpi ne, %1, %c0_i32_0 : i32
    scf.if %2 {
      %cst_38 = arith.constant 0.000000e+00 : f32
      %74 = vector.broadcast %cst_38 : f32 to vector<2x1xf32>
      %c0_39 = arith.constant 0 : index
      %c0_40 = arith.constant 0 : index
      %75 = vector.load %arg9[%c0_39, %c0_40] : memref<2x1xf32, #tpu.memory_space<vmem>>, vector<2x1xf32>
      tpu.vector_store %arg9[%c0_39, %c0_40], %74 {strides = array<i32>} : memref<2x1xf32, #tpu.memory_space<vmem>>, vector<2x1xf32>,
      %cst_41 = arith.constant 0.000000e+00 : f32
      %76 = vector.broadcast %cst_41 : f32 to vector<2x1xf32>
      %c0_42 = arith.constant 0 : index
      %c0_43 = arith.constant 0 : index
      %77 = vector.load %arg10[%c0_42, %c0_43] : memref<2x1xf32, #tpu.memory_space<vmem>>, vector<2x1xf32>
      tpu.vector_store %arg10[%c0_42, %c0_43], %76 {strides = array<i32>} : memref<2x1xf32, #tpu.memory_space<vmem>>, vector<2x1xf32>,
    } else {
    }
    %c0 = arith.constant 0 : index
    %c0_1 = arith.constant 0 : index
    %c0_2 = arith.constant 0 : index
    %3 = vector.load %arg2[%c0, %c0_1, %c0_2] : memref<2x8x32xf32, #tpu.memory_space<vmem>>, vector<2x8x32xf32>
    %c0_3 = arith.constant 0 : index
    %c0_4 = arith.constant 0 : index
    %4 = vector.load %arg3[%c0_3, %c0_4] : memref<2x8xf32, #tpu.memory_space<vmem>>, vector<2x8xf32>
    %c0_5 = arith.constant 0 : index
    %c0_6 = arith.constant 0 : index
    %5 = vector.load %arg4[%c0_5, %c0_6] : memref<2x32xf32, #tpu.memory_space<vmem>>, vector<2x32xf32>
    %c0_7 = arith.constant 0 : index
    %c0_8 = arith.constant 0 : index
    %6 = vector.load %arg5[%c0_7, %c0_8] : memref<2x1xf32, #tpu.memory_space<vmem>>, vector<2x1xf32>
    %c0_9 = arith.constant 0 : index
    %c0_10 = arith.constant 0 : index
    %7 = vector.load %arg6[%c0_9, %c0_10] : memref<2x1xi32, #tpu.memory_space<vmem>>, vector<2x1xi32>
    %c1_i32 = arith.constant 1 : i32
    %8 = arith.muli %arg0, %c1_i32 : i32
    %9 = arith.addi %8, %arg1 : i32
    %10 = tpu.iota {dimensions = array<i32: 0>} : vector<2x1xi32>
    %c2_i32 = arith.constant 2 : i32
    %11 = arith.muli %9, %c2_i32 : i32
    %12 = vector.broadcast %11 : i32 to vector<2x1xi32>
    %13 = arith.addi %12, %10 : vector<2x1xi32>
    %c2_i32_11 = arith.constant 2 : i32
    %14 = vector.broadcast %c2_i32_11 : i32 to vector<2x1xi32>
    %15 = arith.cmpi slt, %13, %14 : vector<2x1xi32>
    %cst = arith.constant 1.000000e-07 : f32
    %cst_12 = arith.constant 0.99999988 : f32
    %16 = vector.broadcast %cst : f32 to vector<2x8xf32>
    %17 = arith.maximumf %16, %4 : vector<2x8xf32>
    %18 = vector.broadcast %cst_12 : f32 to vector<2x8xf32>
    %19 = arith.minimumf %18, %17 : vector<2x8xf32>
    %cst_13 = arith.constant 1.000000e-07 : f32
    %cst_14 = arith.constant 0.99999988 : f32
    %20 = vector.broadcast %cst_13 : f32 to vector<2x1xf32>
    %21 = arith.maximumf %20, %6 : vector<2x1xf32>
    %22 = vector.broadcast %cst_14 : f32 to vector<2x1xf32>
    %23 = arith.minimumf %22, %21 : vector<2x1xf32>
    %24 = math.log %23 : vector<2x1xf32>
    %cst_15 = arith.constant 0.000000e+00 : f32
    %25 = vector.broadcast %cst_15 : f32 to vector<2x1xf32>
    %26 = arith.subf %25, %24 : vector<2x1xf32>
    %27 = arith.mulf %3, %3 : vector<2x8x32xf32>
    %cst_16 = arith.constant dense<0.000000e+00> : vector<2x8xf32>
    %28 = vector.multi_reduction <add>, %27, %cst_16 [2] : vector<2x8x32xf32> to vector<2x8xf32>
    %29 = arith.mulf %5, %5 : vector<2x32xf32>
    %cst_17 = arith.constant dense<0.000000e+00> : vector<2xf32>
    %30 = vector.multi_reduction <add>, %29, %cst_17 [1] : vector<2x32xf32> to vector<2xf32>
    %31 = vector.shape_cast %30 : vector<2xf32> to vector<2x1xf32>
    %32 = vector.shape_cast %5 : vector<2x32xf32> to vector<2x1x32xf32>
    %33 = vector.broadcast %32 : vector<2x1x32xf32> to vector<2x8x32xf32>
    %34 = arith.mulf %3, %33 : vector<2x8x32xf32>
    %cst_18 = arith.constant dense<0.000000e+00> : vector<2x8xf32>
    %35 = vector.multi_reduction <add>, %34, %cst_18 [2] : vector<2x8x32xf32> to vector<2x8xf32>
    %cst_19 = arith.constant 1.000000e-24 : f32
    %36 = vector.broadcast %cst_19 : f32 to vector<2x8xf32>
    %37 = arith.maximumf %28, %36 : vector<2x8xf32>
    %38 = math.rsqrt %37 : vector<2x8xf32>
    %cst_20 = arith.constant 1.000000e-24 : f32
    %39 = vector.broadcast %cst_20 : f32 to vector<2x1xf32>
    %40 = arith.maximumf %31, %39 : vector<2x1xf32>
    %41 = math.rsqrt %40 : vector<2x1xf32>
    %42 = vector.broadcast %41 : vector<2x1xf32> to vector<2x8xf32>
    %43 = arith.mulf %38, %42 : vector<2x8xf32>
    %44 = arith.mulf %35, %43 : vector<2x8xf32>
    %45 = tpu.iota {dimensions = array<i32: 1>} : vector<2x8xi32>
    %cst_21 = arith.constant 0.000000e+00 : f32
    %46 = vector.broadcast %cst_21 : f32 to vector<2x8xf32>
    %47 = arith.cmpf ogt, %44, %46 : vector<2x8xf32>
    %48 = vector.broadcast %7 : vector<2x1xi32> to vector<2x8xi32>
    %49 = arith.cmpi ne, %45, %48 : vector<2x8xi32>
    %50 = arith.andi %47, %49 : vector<2x8xi1>
    %cst_22 = arith.constant 0.000000e+00 : f32
    %51 = vector.broadcast %cst_22 : f32 to vector<2x8xf32>
    %52 = arith.select %50, %44, %51 : vector<2x8xi1>, vector<2x8xf32>
    %cst_23 = arith.constant 1.000000e+00 : f32
    %53 = vector.broadcast %cst_23 : f32 to vector<2x8xf32>
    %54 = arith.subf %53, %19 : vector<2x8xf32>
    %55 = math.log %54 : vector<2x8xf32>
    %56 = arith.mulf %52, %55 : vector<2x8xf32>
    %cst_24 = arith.constant dense<0.000000e+00> : vector<2xf32>
    %57 = vector.multi_reduction <add>, %56, %cst_24 [1] : vector<2x8xf32> to vector<2xf32>
    %58 = vector.shape_cast %57 : vector<2xf32> to vector<2x1xf32>
    %cst_25 = arith.constant 0.000000e+00 : f32
    %59 = vector.broadcast %cst_25 : f32 to vector<2x1xf32>
    %60 = arith.subf %59, %58 : vector<2x1xf32>
    %c0_26 = arith.constant 0 : index
    %c0_27 = arith.constant 0 : index
    %61 = vector.load %arg9[%c0_26, %c0_27] : memref<2x1xf32, #tpu.memory_space<vmem>>, vector<2x1xf32>
    %cst_28 = arith.constant 0.000000e+00 : f32
    %62 = vector.broadcast %cst_28 : f32 to vector<2x1xf32>
    %63 = arith.select %15, %26, %62 : vector<2x1xi1>, vector<2x1xf32>
    %64 = arith.addf %61, %63 : vector<2x1xf32>
    %c0_29 = arith.constant 0 : index
    %c0_30 = arith.constant 0 : index
    %65 = vector.load %arg9[%c0_29, %c0_30] : memref<2x1xf32, #tpu.memory_space<vmem>>, vector<2x1xf32>
    tpu.vector_store %arg9[%c0_29, %c0_30], %64 {strides = array<i32>} : memref<2x1xf32, #tpu.memory_space<vmem>>, vector<2x1xf32>,
    %c0_31 = arith.constant 0 : index
    %c0_32 = arith.constant 0 : index
    %66 = vector.load %arg10[%c0_31, %c0_32] : memref<2x1xf32, #tpu.memory_space<vmem>>, vector<2x1xf32>
    %cst_33 = arith.constant 0.000000e+00 : f32
    %67 = vector.broadcast %cst_33 : f32 to vector<2x1xf32>
    %68 = arith.select %15, %60, %67 : vector<2x1xi1>, vector<2x1xf32>
    %69 = arith.addf %66, %68 : vector<2x1xf32>
    %c0_34 = arith.constant 0 : index
    %c0_35 = arith.constant 0 : index
    %70 = vector.load %arg10[%c0_34, %c0_35] : memref<2x1xf32, #tpu.memory_space<vmem>>, vector<2x1xf32>
    tpu.vector_store %arg10[%c0_34, %c0_35], %69 {strides = array<i32>} : memref<2x1xf32, #tpu.memory_space<vmem>>, vector<2x1xf32>,
    %c0_i32_36 = arith.constant 0 : i32
    %71 = arith.cmpi eq, %arg1, %c0_i32_36 : i32
    %72 = arith.extui %71 : i1 to i32
    %c0_i32_37 = arith.constant 0 : i32
    %73 = arith.cmpi ne, %72, %c0_i32_37 : i32
    scf.if %73 {
      %c0_38 = arith.constant 0 : index
      %c0_39 = arith.constant 0 : index
      %74 = vector.load %arg9[%c0_38, %c0_39] : memref<2x1xf32, #tpu.memory_space<vmem>>, vector<2x1xf32>
      %75 = vector.shape_cast %74 : vector<2x1xf32> to vector<1x2x1xf32>
      %cst_40 = arith.constant dense<0.000000e+00> : vector<1xf32>
      %76 = vector.multi_reduction <add>, %75, %cst_40 [1, 2] : vector<1x2x1xf32> to vector<1xf32>
      %77 = vector.shape_cast %76 : vector<1xf32> to vector<1x1x1xf32>
      %78 = vector.extract %77[0, 0, 0] : f32 from vector<1x1x1xf32>
      %79 = vector.broadcast %78 : f32 to vector<1x1xf32>
      %c0_41 = arith.constant 0 : index
      %c0_42 = arith.constant 0 : index
      %80 = vector.load %arg7[%c0_41, %c0_42] : memref<1x1xf32, #tpu.memory_space<vmem>>, vector<1x1xf32>
      tpu.vector_store %arg7[%c0_41, %c0_42], %79 {strides = array<i32>} : memref<1x1xf32, #tpu.memory_space<vmem>>, vector<1x1xf32>,
      %c0_43 = arith.constant 0 : index
      %c0_44 = arith.constant 0 : index
      %81 = vector.load %arg10[%c0_43, %c0_44] : memref<2x1xf32, #tpu.memory_space<vmem>>, vector<2x1xf32>
      %82 = vector.shape_cast %81 : vector<2x1xf32> to vector<1x2x1xf32>
      %cst_45 = arith.constant dense<0.000000e+00> : vector<1xf32>
      %83 = vector.multi_reduction <add>, %82, %cst_45 [1, 2] : vector<1x2x1xf32> to vector<1xf32>
      %84 = vector.shape_cast %83 : vector<1xf32> to vector<1x1x1xf32>
      %85 = vector.extract %84[0, 0, 0] : f32 from vector<1x1x1xf32>
      %86 = vector.broadcast %85 : f32 to vector<1x1xf32>
      %c0_46 = arith.constant 0 : index
      %c0_47 = arith.constant 0 : index
      %87 = vector.load %arg8[%c0_46, %c0_47] : memref<1x1xf32, #tpu.memory_space<vmem>>, vector<1x1xf32>
      tpu.vector_store %arg8[%c0_46, %c0_47], %86 {strides = array<i32>} : memref<1x1xf32, #tpu.memory_space<vmem>>, vector<1x1xf32>,
    } else {
    }
    return
  }
  func.func @transform_0(%arg0: i32, %arg1: i32) -> (i32, i32, i32) {
    %c1_i32 = arith.constant 1 : i32
    %0 = arith.muli %arg0, %c1_i32 : i32
    %1 = arith.addi %0, %arg1 : i32
    %c0_i32 = arith.constant 0 : i32
    %2 = arith.minsi %1, %c0_i32 : i32
    %c0_i32_0 = arith.constant 0 : i32
    %c0_i32_1 = arith.constant 0 : i32
    %c0_i32_2 = arith.constant 0 : i32
    return %2, %c0_i32_0, %c0_i32_1 : i32, i32, i32
  }
  func.func @transform_1(%arg0: i32, %arg1: i32) -> (i32, i32) {
    %c1_i32 = arith.constant 1 : i32
    %0 = arith.muli %arg0, %c1_i32 : i32
    %1 = arith.addi %0, %arg1 : i32
    %c0_i32 = arith.constant 0 : i32
    %2 = arith.minsi %1, %c0_i32 : i32
    %c0_i32_0 = arith.constant 0 : i32
    %c0_i32_1 = arith.constant 0 : i32
    return %2, %c0_i32_0 : i32, i32
  }
  func.func @transform_2(%arg0: i32, %arg1: i32) -> (i32, i32) {
    %c1_i32 = arith.constant 1 : i32
    %0 = arith.muli %arg0, %c1_i32 : i32
    %1 = arith.addi %0, %arg1 : i32
    %c0_i32 = arith.constant 0 : i32
    %2 = arith.minsi %1, %c0_i32 : i32
    %c0_i32_0 = arith.constant 0 : i32
    %c0_i32_1 = arith.constant 0 : i32
    return %2, %c0_i32_0 : i32, i32
  }
  func.func @transform_3(%arg0: i32, %arg1: i32) -> (i32, i32) {
    %c1_i32 = arith.constant 1 : i32
    %0 = arith.muli %arg0, %c1_i32 : i32
    %1 = arith.addi %0, %arg1 : i32
    %c0_i32 = arith.constant 0 : i32
    %2 = arith.minsi %1, %c0_i32 : i32
    %c0_i32_0 = arith.constant 0 : i32
    %c0_i32_1 = arith.constant 0 : i32
    return %2, %c0_i32_0 : i32, i32
  }
  func.func @transform_4(%arg0: i32, %arg1: i32) -> (i32, i32) {
    %c1_i32 = arith.constant 1 : i32
    %0 = arith.muli %arg0, %c1_i32 : i32
    %1 = arith.addi %0, %arg1 : i32
    %c0_i32 = arith.constant 0 : i32
    %2 = arith.minsi %1, %c0_i32 : i32
    %c0_i32_0 = arith.constant 0 : i32
    %c0_i32_1 = arith.constant 0 : i32
    return %2, %c0_i32_0 : i32, i32
  }
  func.func @transform_5(%arg0: i32, %arg1: i32) -> (i32, i32) {
    %c0_i32 = arith.constant 0 : i32
    %c0_i32_0 = arith.constant 0 : i32
    return %arg0, %c0_i32 : i32, i32
  }
  func.func @transform_6(%arg0: i32, %arg1: i32) -> (i32, i32) {
    %c0_i32 = arith.constant 0 : i32
    %c0_i32_0 = arith.constant 0 : i32
    return %arg0, %c0_i32 : i32, i32
  }
}

</mosaic_0001>

<bundles_post_ra>
// kernel: tpu_custom_call.1
= control target key start
LH: loop header
LB: loop body
LE: loop exit
PB: predicated region body
PF: predicated region fallthrough
CT: control target
= control target key end

     0   :  { %12 = vsyncpa [#allocation5], 0  ;;  %s609_s0 = inlined_call_operand.hbm [shape: f32[2,8,32], index: 0, kind: input, shape index: {}]   ;;  %s610_s1 = inlined_call_operand.vmem [shape: f32[2,8], index: 1, kind: input, shape index: {}]   ;;  %s611_s2 = inlined_call_operand.vmem [shape: f32[2,32], index: 2, kind: input, shape index: {}]   ;;  %s612_s3 = inlined_call_operand.vmem [shape: f32[2,1], index: 3, kind: input, shape index: {}]   ;;  %s613_s4 = inlined_call_operand.vmem [shape: s32[2,1], index: 4, kind: input, shape index: {}]   ;;  %s614_s5 = inlined_call_operand.hbm [shape: f32[1,1], index: 5, kind: output, shape index: {0}]   ;;  %s615_s6 = inlined_call_operand.hbm [shape: f32[1,1], index: 6, kind: output, shape index: {1}]  }
   0x1   :  { %13 = vsyncpa [#allocation6], 0 }
   0x2   :  { %14 = vsyncpa [#allocation9], 0  ;;  %s25_s23 = sshll.u32 %s609_s0, 4  ;;  %s526_s24 = smov [#allocation4]   ;;  %s26_s23 = int_to_ptr.hbm [resolvable:$true] %s25_s23 }
   0x3   :  { %s27_s25 = sshll.u32 %s526_s24, 4  ;;  %s527_s26 = smov 128   ;;  %s28_s25 = int_to_ptr.vmem [resolvable:$true] %s27_s25 }
   0x4   :  { %s528_s27 = smov 8  }
   0x5   :  { %33 = dma.hbm_to_vmem [thread:$0]  %s26_s23, 256, %s28_s25, [#allocation5], %s527_s26, %s527_s26, %s528_s27  }
   0x6   :  { %520 = dma.done.wait [#allocation5], 256  }
   0x7   :  { %521 = vsyncadd [#allocation5], 4294967040  ;;  %v529_v0 = vmov 0   ;;  %v170_v1 = vld [vmem:[%s613_s4] sm:$0x3]  ;;  %v165_v2 = vld [vmem:[#allocation4] sm:$0xff]  ;;  %v172_v9 = vlaneseq }
   0x8   :  { %433 = vset.pattern.permute.xlu0 %v529_v0  ;;  %vm187_vm0 = vcmask 261120   ;;  %v185_v3 = vmul.f32 %v165_v2, %v165_v2  ;;  %v168_v5 = vld [vmem:[%s611_s2] sm:$0x3]  ;;  %v166_v6 = vld [vmem:[#allocation4 + $0x8] sm:$0xff]  ;;  %vm195_vm1 = vcmask 254976   ;;  %s370_s11 = sshll.u32 %s614_s5, 4  ;;  %s371_s11 = int_to_ptr.hbm [resolvable:$true] %s370_s11 }
   0x9   :  { %260 = vperm.xlu0 %433, %v170_v1   ;;  %v201_v7 = vperm.slane %v168_v5, 0  ;;  %v200_v8 = vrot.slane %v168_v5, 1  ;;  %v186_v10 = vmul.f32 %v166_v6, %v166_v6  ;;  %v578_v13 = vshrl.u32 %v172_v9, 7  ;;  %v167_v20 = vld [vmem:[%s610_s1] sm:$0x3]  ;;  %s532_s13 = smov [#allocation8]  }
   0xa   :  { %v188_v4 = vsel %vm187_vm0, %v185_v3, 0.0  ;;  %v194_v18 = vmul.f32 %v168_v5, %v168_v5  ;;  %v178_v21 = vmax.f32 %v167_v20, 1e-07  ;;  %v588_v24 = vand.u32 127, %v172_v9  ;;  %v169_v20 = vld [vmem:[%s612_s3] sm:$0x3] }
   0xb   :  { %189 = vadd.xlane.f32.xlu1 %v188_v4  ;;  %v205_v11 = vmul.f32 %v201_v7, %v165_v2  ;;  %v202_v12 = vperm.slane %v200_v8, 0  ;;  %v191_v14 = vsel %vm187_vm0, %v186_v10, 0.0  ;;  %435 = vset.pattern.permute.xlu2 %v578_v13  ;;  %s531_s3 = smov [#allocation7]   ;;  %s379_s14 = sshll.u32 %s532_s13, 4  ;;  %s380_s14 = int_to_ptr.vmem [resolvable:$true] %s379_s14 }
   0xc   :  { %434 = vset.pattern.permute.xlu1 %v578_v13  ;;  %v196_v19 = vsel %vm195_vm1, %v194_v18, 0.0  ;;  %v179_v22 = vmin.f32 %v178_v21, 0.9999999  ;;  %v180_v21 = vmax.f32 %v169_v20, 1e-07  ;;  %s368_s8 = sshll.u32 %s531_s3, 4  ;;  %s369_s8 = int_to_ptr.vmem [resolvable:$true] %s368_s8 }
   0xd   :  { %v207_v15 = vsel %vm187_vm0, %v205_v11, 0.0  ;;  %v206_v16 = vmul.f32 %v202_v12, %v166_v6  ;;  %v530_v12 = vmov 0.0   ;;  %s381_s17 = sshll.u32 %s615_s6, 4  ;;  %s382_s17 = int_to_ptr.hbm [resolvable:$true] %s381_s17 }
   0xe   :  { %208 = vadd.xlane.f32.xlu2 %v207_v15  ;;  %v284_v23 = vsub.f32 1.0, %v179_v22  ;;  %v181_v22 = vmin.f32 %v180_v21, 0.9999999 }
   0xf   :  { %v210_v17 = vsel %vm187_vm0, %v206_v16, 0.0 }
  0x10   :  { %438 = vlog2.f32 %v284_v23 }
  0x13   :  { %192 = vadd.xlane.f32.xlu1 %v191_v14 }
  0x16   :  { %211 = vadd.xlane.f32.xlu2 %v210_v17  ;;  %v439_v26 = vpop.eup %438 }
  0x17   :  { %v286_v30 = vmul.f32 0.6931472, %v439_v26 }
  0x19   :  { %v295_v31 = vperm.slane %v286_v30, 1  ;;  %v288_v32 = vperm.slane %v286_v30, 0 }
  0x33   :  { %197 = vadd.xlane.f32.xlu0 %v196_v19 }
  0x7b   :  { %v261_v25 = vpop.permute.xlu0 %260 }
  0x7c   :  { %vm262_vm2 = vcmp.ne.s32.totalorder %v588_v24, %v261_v25 }
  0x7d   :  { %v263_v27 = vsel %vm262_vm2, 1, %v529_v0  ;;  %vm162_vm2 = vcmask 1024  }
  0x7e   :  { %v264_v28 = vperm.slane %v263_v27, 0  ;;  %v271_v29 = vperm.slane %v263_v27, 1  ;;  %v190_v33 = vpop.xlane.xlu1 %189  ;;  %163 = vst.msk [vmem:[#allocation2] sm:$0x3] %vm162_vm2, %v530_v12 }
  0x7f   :  { %v213_v37 = vmax.f32 %v190_v33, 1e-24  ;;  %164 = vst.msk [vmem:[#allocation3] sm:$0x3] %vm162_vm2, %v530_v12 }
  0x80   :  { %276 = vperm.xlu2 %435, %v271_v29   ;;  %269 = vperm.xlu1 %434, %v264_v28  }
  0x81   :  { %v209_v46 = vpop.xlane.xlu2 %208  ;;  %vm221_vm6 = vweird.f32 %v213_v37 }
  0x85   :  { %v324_v28 = vld [vmem:[#allocation2] sm:$0x3] }
  0x86   :  { %v193_v36 = vpop.xlane.xlu1 %192  ;;  %v329_v33 = vld [vmem:[#allocation3] sm:$0x3] }
  0x87   :  { %v214_v38 = vmax.f32 %v193_v36, 1e-24 }
  0x88   :  { %300 = vperm.xlu1 %434, %v295_v31   ;;  %293 = vperm.xlu2 %435, %v288_v32  }
  0x89   :  { %v212_v56 = vpop.xlane.xlu2 %211  ;;  %vm231_vm8 = vweird.f32 %v214_v38 }
  0x90   :  { %436 = vset.pattern.permute.xlu2 %v529_v0  ;;  %437 = vset.pattern.permute.xlu1 %v529_v0 }
  0xa6   :  { %v198_v34 = vpop.xlane.xlu0 %197 }
  0xa7   :  { %v235_v35 = vmax.f32 %v198_v34, 1e-24 }
  0xa9   :  { %440 = vrsqrt.f32 %v235_v35  ;;  %vm242_vm3 = vweird.f32 %v235_v35 }
  0xaa   :  { %442 = vrsqrt.f32 %v213_v37 }
  0xab   :  { %444 = vrsqrt.f32 %v214_v38 }
  0xac   :  { %446 = vlog2.f32 %v181_v22 }
  0xaf   :  { %v441_v39 = vpop.eup %440 }
  0xb0   :  { %v237_v40 = vmul.f32 %v441_v39, %v235_v35  ;;  %v443_v41 = vpop.eup %442  ;;  %vm243_vm4 = vweird.f32 %v441_v39 }
  0xb1   :  { %v445_v42 = vpop.eup %444  ;;  %v216_v43 = vmul.f32 %v443_v41, %v213_v37  ;;  %vm244_vm5 = vmor %vm242_vm3, %vm243_vm4  ;;  %vm222_vm7 = vweird.f32 %v443_v41  ;;  %vm316_vm3 = vcmask 1041409   ;;  %vm319_vm4 = vcmask 58368  }
  0xb2   :  { %v238_v44 = vmul.f32 %v441_v39, %v237_v40  ;;  %v226_v45 = vmul.f32 %v445_v42, %v214_v38  ;;  %vm232_vm9 = vweird.f32 %v445_v42  ;;  %vm223_vm10 = vmor %vm221_vm6, %vm222_vm7  ;;  %v447_v23 = vpop.eup %446  ;;  %vm348_vm6 = vcmask 0  }
  0xb3   :  { %v217_v47 = vmul.f32 %v443_v41, %v216_v43  ;;  %vm233_vm11 = vmor %vm231_vm8, %vm232_vm9  ;;  %v183_v25 = vmul.f32 0.6931472, %v447_v23 }
  0xb4   :  { %v239_v48 = vmul.f32 0.5, %v238_v44  ;;  %v227_v49 = vmul.f32 %v445_v42, %v226_v45 }
  0xb5   :  { %v218_v50 = vmul.f32 0.5, %v217_v47  ;;  %v184_v26 = vsub.f32 0.0, %v183_v25 }
  0xb6   :  { %v240_v51 = vsub.f32 1.5, %v239_v48  ;;  %v228_v52 = vmul.f32 0.5, %v227_v49 }
  0xb7   :  { %v219_v53 = vsub.f32 1.5, %v218_v50 }
  0xb8   :  { %v241_v54 = vmul.f32 %v441_v39, %v240_v51  ;;  %v229_v55 = vsub.f32 1.5, %v228_v52 }
  0xb9   :  { %v220_v58 = vmul.f32 %v443_v41, %v219_v53 }
  0xba   :  { %v245_v57 = vsel %vm244_vm5, %v441_v39, %v241_v54  ;;  %v230_v59 = vmul.f32 %v445_v42, %v229_v55  ;;  %vm177_vm5 = vcmp.lt.s32.totalorder %v578_v13, 2 }
  0xbb   :  { %v247_v60 = vperm.slane %v245_v57, 0  ;;  %v224_v61 = vsel %vm223_vm10, %v443_v41, %v220_v58  ;;  %v248_v62 = vperm.slane %v245_v57, 1  ;;  %v325_v27 = vsel %vm177_vm5, %v184_v26, 0.0 }
  0xbc   :  { %v234_v63 = vsel %vm233_vm11, %v445_v42, %v230_v59  ;;  %v326_v29 = vadd.f32 %v325_v27, %v324_v28 }
  0xbd   :  { %v251_v0 = vmul.f32 %v247_v60, %v224_v61  ;;  %v252_v2 = vmul.f32 %v248_v62, %v234_v63 }
  0xbe   :  { %328 = vst.msk [vmem:[#allocation2] sm:$0x3] %vm162_vm2, %v326_v29 }
  0xbf   :  { %v253_v3 = vmul.f32 %v251_v0, %v209_v46  ;;  %v254_v4 = vmul.f32 %v252_v2, %v212_v56 }
  0xc1   :  { %vm257_vm12 = vcmp.gt.f32.partialorder %v253_v3, 0.0  ;;  %vm258_vm14 = vcmp.gt.f32.partialorder %v254_v4, 0.0 }
  0xda   :  { %v277_v1 = vpop.permute.xlu2 %276 }
  0xdb   :  { %vm279_vm15 = vcmp.ne.s32.totalorder %v277_v1, 0 }
  0xdc   :  { %vm281_vm1 = vmand %vm258_vm14, %vm279_vm15 }
  0xdd   :  { %v283_v9 = vsel %vm281_vm1, %v254_v4, 0.0 }
  0xe2   :  { %v294_v6 = vpop.permute.xlu2 %293 }
  0xf2   :  { %v270_v5 = vpop.permute.xlu1 %269 }
  0xf3   :  { %vm278_vm13 = vcmp.ne.s32.totalorder %v270_v5, 0 }
  0xf4   :  { %vm280_vm0 = vmand %vm257_vm12, %vm278_vm13 }
  0xf5   :  { %v282_v7 = vsel %vm280_vm0, %v253_v3, 0.0 }
  0xf6   :  { %v304_v8 = vmul.f32 %v294_v6, %v282_v7 }
  0xf8   :  { %309 = vperm.xlu2 %436, %v304_v8  }
  0xfa   :  { %v301_v10 = vpop.permute.xlu1 %300 }
  0xfb   :  { %v305_v11 = vmul.f32 %v301_v10, %v283_v9 }
  0xfd   :  { %312 = vperm.xlu1 %437, %v305_v11  }
 0x152   :  { %v310_v14 = vpop.permute.xlu2 %309 }
 0x153   :  { %v314_v16 = vperm.slane %v310_v14, %v588_v24 }
 0x16f   :  { %v313_v15 = vpop.permute.xlu1 %312 }
 0x170   :  { %v315_v17 = vperm.slane %v313_v15, %v588_v24  ;;  %v336_v24 = vld [vmem:[#allocation2] sm:$0x3] }
 0x171   :  { %v337_v30 = vsel %vm162_vm2, %v336_v24, 0.0 }
 0x172   :  { %v317_v18 = vsel %vm316_vm3, %v315_v17, %v314_v16  ;;  %338 = vadd.xlane.f32.xlu2 %v337_v30 }
 0x173   :  { %v320_v19 = vsel %vm319_vm4, %v317_v18, 0.0 }
 0x174   :  { %321 = vadd.xlane.f32.xlu0 %v320_v19 }
 0x1e5   :  { %v339_v13 = vpop.xlane.xlu2 %338 }
 0x1e6   :  { %v340_v38 = vrot.slane %v339_v13, 4 }
 0x1e7   :  { %v322_v31 = vpop.xlane.xlu0 %321 }
 0x1e8   :  { %v323_v32 = vsub.f32 0.0, %v322_v31  ;;  %v341_v39 = vadd.f32 %v340_v38, %v339_v13 }
 0x1ea   :  { %v330_v34 = vsel %vm177_vm5, %v323_v32, 0.0  ;;  %v342_v40 = vrot.slane %v341_v39, 2 }
 0x1eb   :  { %v331_v35 = vadd.f32 %v330_v34, %v329_v33 }
 0x1ec   :  { %v343_v41 = vadd.f32 %v342_v40, %v341_v39 }
 0x1ed   :  { %332 = vst.msk [vmem:[#allocation3] sm:$0x3] %vm162_vm2, %v331_v35 }
 0x1ee   :  { %v344_v42 = vrot.slane %v343_v41, 1 }
 0x1f0   :  { %v345_v43 = vadd.f32 %v344_v42, %v343_v41 }
 0x1f2   :  { %422 = vpush %v345_v43 }
 0x1f4   :  { %v350_v36 = vld [vmem:[#allocation3] sm:$0x3] }
 0x1f5   :  { %v351_v37 = vsel %vm162_vm2, %v350_v36, 0.0 }
 0x1f6   :  { %352 = vadd.xlane.f32.xlu1 %v351_v37 }
 0x223   :  { %s423_s12 = spop %422 }
 0x224   :  { %v347_v51 = vstv %s423_s12 }
 0x225   :  { %349 = vst.msk [vmem:[#allocation7] sm:$0x1] %vm348_vm6, %v347_v51 }
 0x226   :  { %373 = dma.vmem_to_hbm [thread:$0]  %s369_s8, 16, %s371_s11, [#allocation6]  }
 0x269   :  { %v353_v44 = vpop.xlane.xlu1 %352 }
 0x26a   :  { %v354_v45 = vrot.slane %v353_v44, 4 }
 0x26c   :  { %v355_v46 = vadd.f32 %v354_v45, %v353_v44 }
 0x26e   :  { %v356_v47 = vrot.slane %v355_v46, 2 }
 0x270   :  { %v357_v48 = vadd.f32 %v356_v47, %v355_v46 }
 0x272   :  { %v358_v49 = vrot.slane %v357_v48, 1 }
 0x274   :  { %v359_v50 = vadd.f32 %v358_v49, %v357_v48 }
 0x276   :  { %424 = vpush %v359_v50 }
 0x2a7   :  { %s425_s18 = spop %424 }
 0x2a8   :  { %v361_v52 = vstv %s425_s18 }
 0x2a9   :  { %362 = vst.msk [vmem:[#allocation8] sm:$0x1] %vm348_vm6, %v361_v52 }
 0x2aa   :  { %384 = dma.vmem_to_hbm [thread:$0]  %s380_s14, 16, %s382_s17, [#allocation9]  }
 0x2ab   :  { %522 = dma.done.wait [#allocation6], 16  }
 0x2ac   :  { %523 = vsyncadd [#allocation6], 4294967280 }
 0x2ad   :  { %524 = dma.done.wait [#allocation9], 16  }
 0x2ae   :  { %525 = vsyncadd [#allocation9], 4294967280 }
 0x2af   :  { %393 = vsyncpa [#allocation5], 1 }
 0x2b0   :  { %394 = vsyncpa [#allocation6], 1 }
 0x2b1   :  { %395 = vsyncpa [#allocation9], 1 }

</bundles_post_ra>
